<compile_context>
chip_gen: v7x
topology: tpu7x:2x2x1
jax: 0.10.0
libtpu: 0.0.40
codegen_flags: <defaults>
</compile_context>

<pallas_src>
import math
import functools

import jax
import jax.numpy as jnp
from jax.experimental import pallas as pl
from jax.experimental.pallas import tpu as pltpu

NEG_INF = -1e30


def _attn_kernel(x_ref, wqkv_ref, bqkv_ref, wo_ref, bo_ref, o_ref,
                 *, n_head, batch, seq):
    """Single-invocation kernel (no grid): everything resident in VMEM.

    x_ref    : (B*T, E)  bf16  batch folded into rows, pre-cast in wrapper
    wqkv_ref : (E, 3E)   bf16  pre-transposed, q-part pre-scaled by 1/sqrt(hd)
    bqkv_ref : (1, 3E)   f32   q-part pre-scaled
    wo_ref   : (E, E)    bf16  pre-transposed
    bo_ref   : (1, E)    f32
    o_ref    : (B*T, E)  f32
    """
    E = wo_ref.shape[-1]
    hd = E // n_head

    # --- fused QKV projection: ONE MXU call over all B*T rows ---
    qkv = jnp.dot(x_ref[...], wqkv_ref[...],
                  preferred_element_type=jnp.float32) + bqkv_ref[...]   # (B*T, 3E) f32
    # Single dense bf16 cast of the whole slab, then a cheap leading-dim split.
    qkv_b = qkv.astype(jnp.bfloat16).reshape(batch, seq, 3 * E)

    # --- causal mask built in-kernel (two VPU compares, no HBM/VMEM residency) ---
    row = jax.lax.broadcasted_iota(jnp.int32, (seq, seq), 0)
    col = jax.lax.broadcasted_iota(jnp.int32, (seq, seq), 1)
    maskb = jnp.where(col <= row, 0.0, NEG_INF).astype(jnp.float32)[None, :, :]
    # ^ broadcast hoisted out of the unrolled head loop (no CSE of broadcast_in_dim)

    # --- per-head attention; outputs stay in vregs (no VMEM scratch) ---
    head_outs = []
    for h in range(n_head):
        o0 = h * hd
        qh = qkv_b[:, :, o0:o0 + hd]                        # (B, T, hd) bf16
        kh = qkv_b[:, :, E + o0:E + o0 + hd]
        vh = qkv_b[:, :, 2 * E + o0:2 * E + o0 + hd]

        s = jnp.einsum('bqd,bkd->bqk', qh, kh,
                       preferred_element_type=jnp.float32)   # (B, T, T) f32
        s = s + maskb                                         # additive causal mask
        m = jnp.max(s, axis=-1, keepdims=True)
        p = jnp.exp(s - m)                                    # softmax math in f32
        denom = jnp.sum(p, axis=-1, keepdims=True)
        p = p * pl.reciprocal(denom, approx=True)             # EUP slot
        head_outs.append(
            jnp.einsum('bqk,bkd->bqd', p.astype(jnp.bfloat16), vh,
                       preferred_element_type=jnp.float32))   # (B, T, hd) f32

    # Lane-axis concat in registers -> lane-contiguous (B*T, E) operand for the
    # out-projection; no masked partial stores / reload / RAW hazard.
    attn = jnp.concatenate(head_outs, axis=-1).reshape(batch * seq, E)

    # --- output projection: ONE MXU call over all B*T rows ---
    y = jnp.dot(attn.astype(jnp.bfloat16), wo_ref[...],
                preferred_element_type=jnp.float32) + bo_ref[...]
    o_ref[...] = y.astype(o_ref.dtype)


def prepare_params(wqkv, bqkv, wo, bo, n_head):
    """One-time (parameter-load-time) preprocessing; cache the result.

    Folds the 1/sqrt(head_dim) scale into the q-part (in f32), pre-transposes the
    weights into lane-contiguous MXU layout, and pre-casts them to bf16.
    """
    E = wo.shape[0]
    hd = E // n_head
    scale = 1.0 / math.sqrt(hd)
    wqkv_s = wqkv.at[:E, :].multiply(scale)                  # f32 scale fold
    bqkv_s = bqkv.at[:E].multiply(scale)
    wqkv_t = wqkv_s.T.astype(jnp.bfloat16)                   # (E, 3E) bf16
    wo_t = wo.T.astype(jnp.bfloat16)                         # (E, E)  bf16
    return (wqkv_t, bqkv_s.reshape(1, 3 * E).astype(jnp.float32),
            wo_t, bo.reshape(1, E).astype(jnp.float32))


def causal_self_attention(x, params, n_head):
    """x: (B, T, E) f32; params from prepare_params(); returns (B, T, E) f32."""
    B, T, E = x.shape
    wqkv_t, bqkv_s, wo_t, bo2 = params
    # Fold batch into rows and pre-cast the activation to bf16 (half the DMA bytes).
    x2 = x.reshape(B * T, E).astype(jnp.bfloat16)

    kernel = functools.partial(_attn_kernel, n_head=n_head, batch=B, seq=T)
    out2 = pl.pallas_call(
        kernel,
        out_shape=jax.ShapeDtypeStruct((B * T, E), x.dtype),
        # No grid: one invocation, all operands resident in VMEM (tiny problem).
        in_specs=[pl.BlockSpec(memory_space=pltpu.MemorySpace.VMEM)] * 5,
        out_specs=pl.BlockSpec(memory_space=pltpu.MemorySpace.VMEM),
    )(x2, wqkv_t, bqkv_s, wo_t, bo2)
    return out2.reshape(B, T, E)


def reference(x, wqkv, bqkv, wo, bo, n_head):
    """Pure-JAX f32 reference matching F.multi_head_attention_forward (eval, causal)."""
    B, T, E = x.shape
    hd = E // n_head
    qkv = jnp.einsum("bte,fe->btf", x, wqkv) + bqkv
    q, k, v = jnp.split(qkv, 3, axis=-1)

    def split_heads(t):
        return t.reshape(B, T, n_head, hd).transpose(0, 2, 1, 3)   # (B, nh, T, hd)

    q, k, v = map(split_heads, (q, k, v))
    s = jnp.einsum("bhqd,bhkd->bhqk", q, k) / math.sqrt(hd)
    m = jnp.tril(jnp.ones((T, T), dtype=bool))
    s = jnp.where(m[None, None], s, NEG_INF)
    p = jax.nn.softmax(s, axis=-1)
    o = jnp.einsum("bhqk,bhkd->bhqd", p, v)
    o = o.transpose(0, 2, 1, 3).reshape(B, T, E)
    return jnp.einsum("bte,fe->btf", o, wo) + bo


if __name__ == "__main__":
    # cfg: n_embd=32, n_head=4, block_size=8, dropout=0.0, bias=True
    B, T, E, n_head = 2, 8, 32, 4

    key = jax.random.PRNGKey(0)
    kx, kw1, kb1, kw2, kb2 = jax.random.split(key, 5)

    x = jax.random.normal(kx, (B, T, E), dtype=jnp.float32)
    lim_in = math.sqrt(6.0 / (E + 3 * E))
    wqkv = jax.random.uniform(kw1, (3 * E, E), jnp.float32, -lim_in, lim_in)
    bqkv = jax.random.normal(kb1, (3 * E,), jnp.float32) * 0.02
    lim_out = math.sqrt(1.0 / E)
    wo = jax.random.uniform(kw2, (E, E), jnp.float32, -lim_out, lim_out)
    bo = jax.random.normal(kb2, (E,), jnp.float32) * 0.02

    # Parameter preprocessing done once (load time), not in the forward path.
    params = prepare_params(wqkv, bqkv, wo, bo, n_head)

    out = causal_self_attention(x, params, n_head)
    out = jax.block_until_ready(out)

    ref = reference(x, wqkv, bqkv, wo, bo, n_head)
    assert out.shape == (B, T, E)
    # Tolerance accounts for bf16 activations/weights on the MXU + approx reciprocal
    # vs the pure-f32 reference.
    assert jnp.allclose(out, ref, atol=3e-2, rtol=3e-2), (
        f"max abs err = {jnp.max(jnp.abs(out - ref))}")

    print("KERNEL_OK")
</pallas_src>

<mosaic_0001>
module attributes {stable_mosaic.version = 11 : i64} {
  func.func @_attn_kernel(%arg0: memref<16x32xbf16, #tpu.memory_space<vmem>>, %arg1: memref<32x96xbf16, #tpu.memory_space<vmem>>, %arg2: memref<1x96xf32, #tpu.memory_space<vmem>>, %arg3: memref<32x32xbf16, #tpu.memory_space<vmem>>, %arg4: memref<1x32xf32, #tpu.memory_space<vmem>>, %arg5: memref<16x32xf32, #tpu.memory_space<vmem>>) attributes {dimension_semantics = [], scalar_prefetch = 0 : i64, scratch_operands = 0 : i64, tpu.core_type = #tpu.core_type<tc>} {
    %c0 = arith.constant 0 : index
    %c0_0 = arith.constant 0 : index
    %0 = vector.load %arg0[%c0, %c0_0] : memref<16x32xbf16, #tpu.memory_space<vmem>>, vector<16x32xbf16>
    %c0_1 = arith.constant 0 : index
    %c0_2 = arith.constant 0 : index
    %1 = vector.load %arg1[%c0_1, %c0_2] : memref<32x96xbf16, #tpu.memory_space<vmem>>, vector<32x96xbf16>
    %cst = arith.constant dense<0.000000e+00> : vector<16x96xf32>
    %2 = tpu.matmul %0, %1, %cst {dimension_numbers = #tpu.dot_dimension_numbers<[1], [0], [0], [1], [0, 0, 1, 1], [], []>} : vector<16x32xbf16>, vector<32x96xbf16>, vector<16x96xf32> -> vector<16x96xf32>
    %c0_3 = arith.constant 0 : index
    %c0_4 = arith.constant 0 : index
    %3 = vector.load %arg2[%c0_3, %c0_4] : memref<1x96xf32, #tpu.memory_space<vmem>>, vector<1x96xf32>
    %4 = vector.broadcast %3 : vector<1x96xf32> to vector<16x96xf32>
    %5 = arith.addf %2, %4 : vector<16x96xf32>
    %6 = arith.truncf %5 : vector<16x96xf32> to vector<16x96xbf16>
    %7 = vector.shape_cast %6 : vector<16x96xbf16> to vector<2x8x96xbf16>
    %8 = tpu.iota {dimensions = array<i32: 0>} : vector<8x8xi32>
    %9 = tpu.iota {dimensions = array<i32: 1>} : vector<8x8xi32>
    %10 = arith.cmpi sle, %9, %8 : vector<8x8xi32>
    %cst_5 = arith.constant 0.000000e+00 : f32
    %cst_6 = arith.constant -1.000000e+30 : f32
    %11 = vector.broadcast %cst_5 : f32 to vector<8x8xf32>
    %12 = vector.broadcast %cst_6 : f32 to vector<8x8xf32>
    %13 = arith.select %10, %11, %12 : vector<8x8xi1>, vector<8x8xf32>
    %14 = vector.shape_cast %13 : vector<8x8xf32> to vector<1x8x8xf32>
    %15 = vector.extract_strided_slice %7 {offsets = [0, 0, 0], sizes = [2, 8, 8], strides = [1, 1, 1]} : vector<2x8x96xbf16> to vector<2x8x8xbf16>
    %16 = vector.extract_strided_slice %7 {offsets = [0, 0, 32], sizes = [2, 8, 8], strides = [1, 1, 1]} : vector<2x8x96xbf16> to vector<2x8x8xbf16>
    %17 = vector.extract_strided_slice %7 {offsets = [0, 0, 64], sizes = [2, 8, 8], strides = [1, 1, 1]} : vector<2x8x96xbf16> to vector<2x8x8xbf16>
    "tpu.trace_start"() <{level = 10 : i32, message = "bqd,bkd->bqk"}> : () -> ()
    %cst_7 = arith.constant dense<0.000000e+00> : vector<2x8x8xf32>
    %18 = tpu.matmul %15, %16, %cst_7 {dimension_numbers = #tpu.dot_dimension_numbers<[2], [2], [1], [1], [0, 0, 0, 1, 1, 1], [0], [0]>} : vector<2x8x8xbf16>, vector<2x8x8xbf16>, vector<2x8x8xf32> -> vector<2x8x8xf32>
    "tpu.trace_stop"() : () -> ()
    %19 = vector.broadcast %14 : vector<1x8x8xf32> to vector<2x8x8xf32>
    %20 = arith.addf %18, %19 : vector<2x8x8xf32>
    %cst_8 = arith.constant dense<0xFF800000> : vector<2x8xf32>
    %21 = vector.multi_reduction <maximumf>, %20, %cst_8 [2] : vector<2x8x8xf32> to vector<2x8xf32>
    %22 = vector.shape_cast %21 : vector<2x8xf32> to vector<2x8x1xf32>
    %23 = vector.broadcast %22 : vector<2x8x1xf32> to vector<2x8x8xf32>
    %24 = arith.subf %20, %23 : vector<2x8x8xf32>
    %25 = math.exp %24 : vector<2x8x8xf32>
    %cst_9 = arith.constant dense<0.000000e+00> : vector<2x8xf32>
    %26 = vector.multi_reduction <add>, %25, %cst_9 [2] : vector<2x8x8xf32> to vector<2x8xf32>
    %27 = vector.shape_cast %26 : vector<2x8xf32> to vector<2x8x1xf32>
    %28 = tpu.reciprocal %27 {approx = true} : vector<2x8x1xf32> -> vector<2x8x1xf32>
    %29 = vector.broadcast %28 : vector<2x8x1xf32> to vector<2x8x8xf32>
    %30 = arith.mulf %25, %29 : vector<2x8x8xf32>
    %31 = arith.truncf %30 : vector<2x8x8xf32> to vector<2x8x8xbf16>
    "tpu.trace_start"() <{level = 10 : i32, message = "bqk,bkd->bqd"}> : () -> ()
    %cst_10 = arith.constant dense<0.000000e+00> : vector<2x8x8xf32>
    %32 = tpu.matmul %31, %17, %cst_10 {dimension_numbers = #tpu.dot_dimension_numbers<[2], [1], [1], [2], [0, 0, 0, 1, 1, 2], [0], [0]>} : vector<2x8x8xbf16>, vector<2x8x8xbf16>, vector<2x8x8xf32> -> vector<2x8x8xf32>
    "tpu.trace_stop"() : () -> ()
    %33 = vector.extract_strided_slice %7 {offsets = [0, 0, 8], sizes = [2, 8, 8], strides = [1, 1, 1]} : vector<2x8x96xbf16> to vector<2x8x8xbf16>
    %34 = vector.extract_strided_slice %7 {offsets = [0, 0, 40], sizes = [2, 8, 8], strides = [1, 1, 1]} : vector<2x8x96xbf16> to vector<2x8x8xbf16>
    %35 = vector.extract_strided_slice %7 {offsets = [0, 0, 72], sizes = [2, 8, 8], strides = [1, 1, 1]} : vector<2x8x96xbf16> to vector<2x8x8xbf16>
    "tpu.trace_start"() <{level = 10 : i32, message = "bqd,bkd->bqk"}> : () -> ()
    %cst_11 = arith.constant dense<0.000000e+00> : vector<2x8x8xf32>
    %36 = tpu.matmul %33, %34, %cst_11 {dimension_numbers = #tpu.dot_dimension_numbers<[2], [2], [1], [1], [0, 0, 0, 1, 1, 1], [0], [0]>} : vector<2x8x8xbf16>, vector<2x8x8xbf16>, vector<2x8x8xf32> -> vector<2x8x8xf32>
    "tpu.trace_stop"() : () -> ()
    %37 = vector.broadcast %14 : vector<1x8x8xf32> to vector<2x8x8xf32>
    %38 = arith.addf %36, %37 : vector<2x8x8xf32>
    %cst_12 = arith.constant dense<0xFF800000> : vector<2x8xf32>
    %39 = vector.multi_reduction <maximumf>, %38, %cst_12 [2] : vector<2x8x8xf32> to vector<2x8xf32>
    %40 = vector.shape_cast %39 : vector<2x8xf32> to vector<2x8x1xf32>
    %41 = vector.broadcast %40 : vector<2x8x1xf32> to vector<2x8x8xf32>
    %42 = arith.subf %38, %41 : vector<2x8x8xf32>
    %43 = math.exp %42 : vector<2x8x8xf32>
    %cst_13 = arith.constant dense<0.000000e+00> : vector<2x8xf32>
    %44 = vector.multi_reduction <add>, %43, %cst_13 [2] : vector<2x8x8xf32> to vector<2x8xf32>
    %45 = vector.shape_cast %44 : vector<2x8xf32> to vector<2x8x1xf32>
    %46 = tpu.reciprocal %45 {approx = true} : vector<2x8x1xf32> -> vector<2x8x1xf32>
    %47 = vector.broadcast %46 : vector<2x8x1xf32> to vector<2x8x8xf32>
    %48 = arith.mulf %43, %47 : vector<2x8x8xf32>
    %49 = arith.truncf %48 : vector<2x8x8xf32> to vector<2x8x8xbf16>
    "tpu.trace_start"() <{level = 10 : i32, message = "bqk,bkd->bqd"}> : () -> ()
    %cst_14 = arith.constant dense<0.000000e+00> : vector<2x8x8xf32>
    %50 = tpu.matmul %49, %35, %cst_14 {dimension_numbers = #tpu.dot_dimension_numbers<[2], [1], [1], [2], [0, 0, 0, 1, 1, 2], [0], [0]>} : vector<2x8x8xbf16>, vector<2x8x8xbf16>, vector<2x8x8xf32> -> vector<2x8x8xf32>
    "tpu.trace_stop"() : () -> ()
    %51 = vector.extract_strided_slice %7 {offsets = [0, 0, 16], sizes = [2, 8, 8], strides = [1, 1, 1]} : vector<2x8x96xbf16> to vector<2x8x8xbf16>
    %52 = vector.extract_strided_slice %7 {offsets = [0, 0, 48], sizes = [2, 8, 8], strides = [1, 1, 1]} : vector<2x8x96xbf16> to vector<2x8x8xbf16>
    %53 = vector.extract_strided_slice %7 {offsets = [0, 0, 80], sizes = [2, 8, 8], strides = [1, 1, 1]} : vector<2x8x96xbf16> to vector<2x8x8xbf16>
    "tpu.trace_start"() <{level = 10 : i32, message = "bqd,bkd->bqk"}> : () -> ()
    %cst_15 = arith.constant dense<0.000000e+00> : vector<2x8x8xf32>
    %54 = tpu.matmul %51, %52, %cst_15 {dimension_numbers = #tpu.dot_dimension_numbers<[2], [2], [1], [1], [0, 0, 0, 1, 1, 1], [0], [0]>} : vector<2x8x8xbf16>, vector<2x8x8xbf16>, vector<2x8x8xf32> -> vector<2x8x8xf32>
    "tpu.trace_stop"() : () -> ()
    %55 = vector.broadcast %14 : vector<1x8x8xf32> to vector<2x8x8xf32>
    %56 = arith.addf %54, %55 : vector<2x8x8xf32>
    %cst_16 = arith.constant dense<0xFF800000> : vector<2x8xf32>
    %57 = vector.multi_reduction <maximumf>, %56, %cst_16 [2] : vector<2x8x8xf32> to vector<2x8xf32>
    %58 = vector.shape_cast %57 : vector<2x8xf32> to vector<2x8x1xf32>
    %59 = vector.broadcast %58 : vector<2x8x1xf32> to vector<2x8x8xf32>
    %60 = arith.subf %56, %59 : vector<2x8x8xf32>
    %61 = math.exp %60 : vector<2x8x8xf32>
    %cst_17 = arith.constant dense<0.000000e+00> : vector<2x8xf32>
    %62 = vector.multi_reduction <add>, %61, %cst_17 [2] : vector<2x8x8xf32> to vector<2x8xf32>
    %63 = vector.shape_cast %62 : vector<2x8xf32> to vector<2x8x1xf32>
    %64 = tpu.reciprocal %63 {approx = true} : vector<2x8x1xf32> -> vector<2x8x1xf32>
    %65 = vector.broadcast %64 : vector<2x8x1xf32> to vector<2x8x8xf32>
    %66 = arith.mulf %61, %65 : vector<2x8x8xf32>
    %67 = arith.truncf %66 : vector<2x8x8xf32> to vector<2x8x8xbf16>
    "tpu.trace_start"() <{level = 10 : i32, message = "bqk,bkd->bqd"}> : () -> ()
    %cst_18 = arith.constant dense<0.000000e+00> : vector<2x8x8xf32>
    %68 = tpu.matmul %67, %53, %cst_18 {dimension_numbers = #tpu.dot_dimension_numbers<[2], [1], [1], [2], [0, 0, 0, 1, 1, 2], [0], [0]>} : vector<2x8x8xbf16>, vector<2x8x8xbf16>, vector<2x8x8xf32> -> vector<2x8x8xf32>
    "tpu.trace_stop"() : () -> ()
    %69 = vector.extract_strided_slice %7 {offsets = [0, 0, 24], sizes = [2, 8, 8], strides = [1, 1, 1]} : vector<2x8x96xbf16> to vector<2x8x8xbf16>
    %70 = vector.extract_strided_slice %7 {offsets = [0, 0, 56], sizes = [2, 8, 8], strides = [1, 1, 1]} : vector<2x8x96xbf16> to vector<2x8x8xbf16>
    %71 = vector.extract_strided_slice %7 {offsets = [0, 0, 88], sizes = [2, 8, 8], strides = [1, 1, 1]} : vector<2x8x96xbf16> to vector<2x8x8xbf16>
    "tpu.trace_start"() <{level = 10 : i32, message = "bqd,bkd->bqk"}> : () -> ()
    %cst_19 = arith.constant dense<0.000000e+00> : vector<2x8x8xf32>
    %72 = tpu.matmul %69, %70, %cst_19 {dimension_numbers = #tpu.dot_dimension_numbers<[2], [2], [1], [1], [0, 0, 0, 1, 1, 1], [0], [0]>} : vector<2x8x8xbf16>, vector<2x8x8xbf16>, vector<2x8x8xf32> -> vector<2x8x8xf32>
    "tpu.trace_stop"() : () -> ()
    %73 = vector.broadcast %14 : vector<1x8x8xf32> to vector<2x8x8xf32>
    %74 = arith.addf %72, %73 : vector<2x8x8xf32>
    %cst_20 = arith.constant dense<0xFF800000> : vector<2x8xf32>
    %75 = vector.multi_reduction <maximumf>, %74, %cst_20 [2] : vector<2x8x8xf32> to vector<2x8xf32>
    %76 = vector.shape_cast %75 : vector<2x8xf32> to vector<2x8x1xf32>
    %77 = vector.broadcast %76 : vector<2x8x1xf32> to vector<2x8x8xf32>
    %78 = arith.subf %74, %77 : vector<2x8x8xf32>
    %79 = math.exp %78 : vector<2x8x8xf32>
    %cst_21 = arith.constant dense<0.000000e+00> : vector<2x8xf32>
    %80 = vector.multi_reduction <add>, %79, %cst_21 [2] : vector<2x8x8xf32> to vector<2x8xf32>
    %81 = vector.shape_cast %80 : vector<2x8xf32> to vector<2x8x1xf32>
    %82 = tpu.reciprocal %81 {approx = true} : vector<2x8x1xf32> -> vector<2x8x1xf32>
    %83 = vector.broadcast %82 : vector<2x8x1xf32> to vector<2x8x8xf32>
    %84 = arith.mulf %79, %83 : vector<2x8x8xf32>
    %85 = arith.truncf %84 : vector<2x8x8xf32> to vector<2x8x8xbf16>
    "tpu.trace_start"() <{level = 10 : i32, message = "bqk,bkd->bqd"}> : () -> ()
    %cst_22 = arith.constant dense<0.000000e+00> : vector<2x8x8xf32>
    %86 = tpu.matmul %85, %71, %cst_22 {dimension_numbers = #tpu.dot_dimension_numbers<[2], [1], [1], [2], [0, 0, 0, 1, 1, 2], [0], [0]>} : vector<2x8x8xbf16>, vector<2x8x8xbf16>, vector<2x8x8xf32> -> vector<2x8x8xf32>
    "tpu.trace_stop"() : () -> ()
    %87 = tpu.concatenate %32, %50, %68, %86 in 2 : vector<2x8x8xf32>, vector<2x8x8xf32>, vector<2x8x8xf32>, vector<2x8x8xf32> -> vector<2x8x32xf32>
    %88 = vector.shape_cast %87 : vector<2x8x32xf32> to vector<16x32xf32>
    %89 = arith.truncf %88 : vector<16x32xf32> to vector<16x32xbf16>
    %c0_23 = arith.constant 0 : index
    %c0_24 = arith.constant 0 : index
    %90 = vector.load %arg3[%c0_23, %c0_24] : memref<32x32xbf16, #tpu.memory_space<vmem>>, vector<32x32xbf16>
    %cst_25 = arith.constant dense<0.000000e+00> : vector<16x32xf32>
    %91 = tpu.matmul %89, %90, %cst_25 {dimension_numbers = #tpu.dot_dimension_numbers<[1], [0], [0], [1], [0, 0, 1, 1], [], []>} : vector<16x32xbf16>, vector<32x32xbf16>, vector<16x32xf32> -> vector<16x32xf32>
    %c0_26 = arith.constant 0 : index
    %c0_27 = arith.constant 0 : index
    %92 = vector.load %arg4[%c0_26, %c0_27] : memref<1x32xf32, #tpu.memory_space<vmem>>, vector<1x32xf32>
    %93 = vector.broadcast %92 : vector<1x32xf32> to vector<16x32xf32>
    %94 = arith.addf %91, %93 : vector<16x32xf32>
    %c0_28 = arith.constant 0 : index
    %c0_29 = arith.constant 0 : index
    %95 = vector.load %arg5[%c0_28, %c0_29] : memref<16x32xf32, #tpu.memory_space<vmem>>, vector<16x32xf32>
    tpu.vector_store %arg5[%c0_28, %c0_29], %94 {strides = array<i32>} : memref<16x32xf32, #tpu.memory_space<vmem>>, vector<16x32xf32>,
    return
  }
}

</mosaic_0001>

<bundles_post_ra>
// kernel: tpu_custom_call.1
= control target key start
LH: loop header
LB: loop body
LE: loop exit
PB: predicated region body
PF: predicated region fallthrough
CT: control target
= control target key end

     0   :  { %10 = vsyncpa [#allocation3], 0  ;;  %s1786_s0 = inlined_call_operand.hbm [shape: bf16[16,32], index: 0, kind: input, shape index: {}]   ;;  %s1787_s1 = inlined_call_operand.hbm [shape: bf16[32,96], index: 1, kind: input, shape index: {}]   ;;  %s1788_s2 = inlined_call_operand.vmem [shape: f32[1,96], index: 2, kind: input, shape index: {}]   ;;  %s1789_s3 = inlined_call_operand.hbm [shape: bf16[32,32], index: 3, kind: input, shape index: {}]   ;;  %s1790_s4 = inlined_call_operand.vmem [shape: f32[1,32], index: 4, kind: input, shape index: {}]   ;;  %s1791_s5 = inlined_call_operand.hbm [shape: f32[16,32], index: 5, kind: output, shape index: {}]  }
   0x1   :  { %11 = vsyncpa [#allocation6], 0 }
   0x2   :  { %12 = vsyncpa [#allocation4], 0  ;;  %s1496_s18 = smov [#allocation5]   ;;  %s1497_s20 = smov [#allocation2]  }
   0x3   :  { %s30_s19 = sshll.u32 %s1496_s18, 4  ;;  %s18_s21 = sshll.u32 %s1497_s20, 4  ;;  %s31_s19 = int_to_ptr.vmem [resolvable:$true] %s30_s19  ;;  %s1549_s21 = int_to_ptr.vmem [resolvable:$true] %s18_s21 }
   0x4   :  { %s1402_s24 = scalar_lea.hbm %s1787_s1, 256 }
   0x5   :  { %p1403_p0 = scmp.ne.s32.totalorder %s1787_s1, %s1402_s24  ;;  %p1406_p1 = scmp.lt.u32.totalorder %s1402_s24, %s1787_s1 }
   0x7   :  { %p1408_p2 = pnand %p1406_p1, %p1403_p0 }
   0x9   :  { %1411 = shalt.err (!%p1408_p2)
}
   0xa   :  { %s1412_s29 = scalar_lea.vmem %s31_s19, 256  ;;  %p1417_p4 = scmp.lt.s32.totalorder %s31_s19, %s31_s19 }
   0xb   :  { %p1413_p3 = scmp.ne.s32.totalorder %s31_s19, %s1412_s29  ;;  %p1418_p5 = scmp.lt.s32.totalorder %s1412_s29, %s1412_s29 }
   0xd   :  { %p1419_p6 = por %p1418_p5, %p1417_p4 }
   0xf   :  { %p1420_p7 = pnand %p1419_p6, %p1413_p3 }
  0x11   :  { %1423 = shalt.err (!%p1420_p7)
}
  0x12   :  { %s1498_s30 = smov 64   ;;  %s1499_s6 = smov 4  }
  0x13   :  { %36 = dma.hbm_to_vmem [thread:$0]  %s1787_s1, 256, %s31_s19, [#allocation6], %s1498_s30, %s1498_s30, %s1499_s6  }
  0x14   :  { %s1424_s11 = scalar_lea.hbm %s1786_s0, 128 }
  0x15   :  { %p1425_p8 = scmp.ne.s32.totalorder %s1786_s0, %s1424_s11  ;;  %p1428_p9 = scmp.lt.u32.totalorder %s1424_s11, %s1786_s0 }
  0x17   :  { %p1430_p10 = pnand %p1428_p9, %p1425_p8 }
  0x19   :  { %1433 = shalt.err (!%p1430_p10)
}
  0x1a   :  { %s1434_s16 = scalar_lea.vmem %s1549_s21, 128  ;;  %p1439_p12 = scmp.lt.s32.totalorder %s1549_s21, %s1549_s21 }
  0x1b   :  { %p1435_p11 = scmp.ne.s32.totalorder %s1549_s21, %s1434_s16  ;;  %p1440_p13 = scmp.lt.s32.totalorder %s1434_s16, %s1434_s16 }
  0x1d   :  { %p1441_p0 = por %p1440_p13, %p1439_p12 }
  0x1f   :  { %p1442_p1 = pnand %p1441_p0, %p1435_p11 }
  0x21   :  { %1445 = shalt.err (!%p1442_p1)
}
  0x22   :  { %24 = dma.hbm_to_vmem [thread:$0]  %s1786_s0, 128, %s1549_s21, [#allocation3], %s1498_s30, %s1498_s30, %s1499_s6  }
  0x23   :  { %s1500_s18 = smov [#allocation7]   ;;  %s1446_s23 = scalar_lea.hbm %s1789_s3, 256 }
  0x24   :  { %s44_s19 = sshll.u32 %s1500_s18, 4  ;;  %p1447_p2 = scmp.ne.s32.totalorder %s1789_s3, %s1446_s23  ;;  %s45_s19 = int_to_ptr.vmem [resolvable:$true] %s44_s19 }
  0x25   :  { %p1450_p3 = scmp.lt.u32.totalorder %s1446_s23, %s1789_s3 }
  0x27   :  { %p1452_p4 = pnand %p1450_p3, %p1447_p2 }
  0x29   :  { %1455 = shalt.err (!%p1452_p4)
}
  0x2a   :  { %s1456_s28 = scalar_lea.vmem %s45_s19, 256  ;;  %p1461_p6 = scmp.lt.s32.totalorder %s45_s19, %s45_s19 }
  0x2b   :  { %p1457_p5 = scmp.ne.s32.totalorder %s45_s19, %s1456_s28  ;;  %p1462_p7 = scmp.lt.s32.totalorder %s1456_s28, %s1456_s28 }
  0x2d   :  { %p1463_p8 = por %p1462_p7, %p1461_p6 }
  0x2f   :  { %p1464_p9 = pnand %p1463_p8, %p1457_p5 }
  0x31   :  { %1467 = shalt.err (!%p1464_p9)
}
  0x32   :  { %50 = dma.hbm_to_vmem [thread:$0]  %s1789_s3, 256, %s45_s19, [#allocation6], %s1498_s30, %s1498_s30, %s1499_s6  }
  0x33   :  { %1490 = dma.done.wait [#allocation3], 128  }
  0x34   :  { %1491 = vsyncadd [#allocation3], 4294967168 }
  0x35   :  { %1492 = dma.done.wait [#allocation6], 512  }
  0x36   :  { %1493 = vsyncadd [#allocation6], 4294966784  ;;  %v1501_v0 = vmov 0.0   ;;  %vm1502_vm0 = vmmov 0   ;;  %v1365_v1 = vld [vmem:[#allocation5] sm:$0xff]   ;;  %v1366_v2 = vld [vmem:[#allocation5 + $0x8] sm:$0xff]   ;;  %v144_v17 = vlaneseq }
  0x37   :  { %1215 = vmatprep.subr.bf16.mxu0 %v1501_v0  ;;  %1219 = vmatprep.mubr.msk.bf16.mxu0 %vm1502_vm0, %v1501_v0  ;;  %v1367_v3 = vld [vmem:[#allocation2] sm:$0xff]   ;;  %vm93_vm1 = vcmask 261120   ;;  %s1503_s6 = smov 96   ;;  %vm152_vm2 = vcmask 64512   ;;  %v1504_v20 = vmov -1e+30  }
  0x38   :  { %1223 = vmatprep.subr.bf16.mxu1 %v1501_v0  ;;  %1225 = vmatprep.mubr.msk.bf16.mxu1 %vm1502_vm0, %v1501_v0  ;;  %v1148_v4 = vld [vmem:[%s1788_s2] ss:$0 sm:$0xff]  ;;  %v145_v18 = vshrl.u32 %v144_v17, 7  ;;  %v147_v19 = vand.u32 127, %v144_v17  ;;  %s1505_s2 = smov 88   ;;  %vm276_vm4 = vcmask 1043456  }
  0x39   :  { %1216 = vmatpush3.bf16.msra.mxu0 %v1365_v1  ;;  %s1507_s7 = smov 56   ;;  %s1508_s8 = smov 80   ;;  %vm1054_vm5 = vcmask 130048   ;;  %vm1057_vm6 = vcmask 195584  }
  0x3a   :  { %1217 = vmatprep.subr.bf16.mxu0 %v1501_v0  ;;  %vm148_vm3 = vcmp.le.s32.totalorder %v147_v19, %v145_v18  ;;  %s1509_s9 = smov 112   ;;  %s1510_s10 = smov 48  }
  0x3b   :  { %v1633_v21 = vsel %vm148_vm3, 0.0, %v1504_v20  ;;  %s1511_s11 = smov 72   ;;  %s1512_s12 = smov 104  }
  0x3c   :  { %s1513_s13 = smov 40   ;;  %s1514_s14 = smov 8  }
  0x3d   :  { %1218 = vmatpush3.bf16.msra.mxu0 %v1366_v2  ;;  %s1515_s15 = smov 16   ;;  %s1516_s16 = smov 24  }
  0x3e   :  { %1229 = vmatprep.subr.bf16.mxu0 %v1501_v0  ;;  %s1517_s18 = smov [#allocation8]  }
  0x3f   :  { %s1135_s19 = sshll.u32 %s1517_s18, 4  ;;  %s1136_s19 = int_to_ptr.vmem [resolvable:$true] %s1135_s19 }
  0x40   :  { %1220 = vmatmul.mubr.msk.bf16.vlgmr.msra.gmra.mrb[0].mxu0 %vm93_vm1, %v1367_v3  ;;  %s1468_s20 = scalar_lea.vmem %s1136_s19, 256  ;;  %p1473_p11 = scmp.lt.s32.totalorder %s1136_s19, %s1136_s19 }
  0x41   :  { %1231 = vmatprep.mubr.msk.bf16.mxu0 %vm1502_vm0, %v1501_v0  ;;  %p1469_p10 = scmp.ne.s32.totalorder %s1136_s19, %s1468_s20  ;;  %p1474_p12 = scmp.lt.s32.totalorder %s1468_s20, %s1468_s20 }
  0x43   :  { %p1475_p13 = por %p1474_p12, %p1473_p11 }
  0x45   :  { %p1476_p0 = pnand %p1475_p13, %p1469_p10 }
 0x113   :  { %v131_v5 = vpop.f32.mrb[0].mxu0 }
 0x114   :  { %v132_v6 = vadd.f32 %v1148_v4, %v131_v5  ;;  %v1221_v7 = vpop.f32.mrb[1].mxu0 }
 0x115   :  { %v134_v8 = vpop.f32.mrb[2].mxu0 }
 0x116   :  { %v1615_v9 = vpack.c.bf16 %v132_v6, %v132_v6  ;;  %v135_v10 = vadd.f32 %v1148_v4, %v134_v8  ;;  %v1222_v11 = vpop.f32.mrb[3].mxu0 }
 0x118   :  { %150 = vrot.lane.b32.xlu0 %v1615_v9, %s1503_s6  ;;  %v1618_v12 = vpack.c.bf16 %v135_v10, %v135_v10 }
 0x11c   :  { %199 = vrot.lane.b32.xlu0 %v1618_v12, %s1503_s6 }
 0x18a   :  { %v151_v13 = vpop.permute.xlu0 %150 }
 0x18b   :  { %v157_v14 = vsel %vm152_vm2, %v151_v13, 0 }
 0x18c   :  { %1224 = vmatpush3.bf16.xpose.msra.mxu1 %v157_v14 }
 0x18d   :  { %1235 = vmatprep.subr.bf16.mxu1 %v1501_v0 }
 0x18e   :  { %v200_v15 = vpop.permute.xlu0 %199 }
 0x18f   :  { %v205_v16 = vsel %vm152_vm2, %v200_v15, 0 }
 0x190   :  { %1230 = vmatpush3.bf16.xpose.msra.mxu0 %v205_v16 }
 0x191   :  { %1241 = vmatprep.subr.bf16.mxu0 %v1501_v0 }
 0x193   :  { %1226 = vmatmul.mubr.msk.bf16.vlgmr.msra.gmra.mrb[0].mxu1 %vm152_vm2, %v1615_v9 }
 0x194   :  { %1237 = vmatprep.mubr.msk.bf16.mxu1 %vm1502_vm0, %v1501_v0 }
 0x197   :  { %1232 = vmatmul.mubr.msk.bf16.vlgmr.msra.gmra.mrb[4].mxu0 %vm152_vm2, %v1618_v12 }
 0x198   :  { %1243 = vmatprep.mubr.msk.bf16.mxu0 %vm1502_vm0, %v1501_v0 }
 0x266   :  { %v193_v22 = vpop.f32.mrb[0].mxu1 }
 0x267   :  { %v194_v23 = vadd.f32 %v193_v22, %v1633_v21  ;;  %v1227_v24 = vpop.f32.mrb[1].mxu1 }
 0x268   :  { %v196_v25 = vpop.f32.mrb[2].mxu1 }
 0x269   :  { %v1228_v26 = vpop.f32.mrb[3].mxu1  ;;  %v247_v27 = vsel %vm152_vm2, %v194_v23, -inf }
 0x26a   :  { %248 = vmax.xlane.f32.xlu1 %v247_v27  ;;  %v241_v28 = vpop.f32.mrb[4].mxu0 }
 0x26b   :  { %v242_v29 = vadd.f32 %v241_v28, %v1633_v21  ;;  %v1233_v30 = vpop.f32.mrb[5].mxu0 }
 0x26c   :  { %v244_v31 = vpop.f32.mrb[6].mxu0 }
 0x26d   :  { %v1234_v32 = vpop.f32.mrb[7].mxu0  ;;  %v250_v33 = vsel %vm152_vm2, %v242_v29, -inf }
 0x26e   :  { %251 = vmax.xlane.f32.xlu1 %v250_v33 }
 0x27f   :  { %271 = vrot.lane.b32.xlu1 %v1615_v9, %s1498_s30 }
 0x283   :  { %320 = vrot.lane.b32.xlu1 %v1618_v12, %s1498_s30  ;;  %s1506_s30 = smov 120  }
 0x287   :  { %370 = vrot.lane.b32.xlu1 %v1615_v9, %s1505_s2 }
 0x2f7   :  { %v249_v34 = vpop.xlane.xlu1 %248 }
 0x2f8   :  { %v253_v35 = vsub.f32 %v194_v23, %v249_v34 }
 0x2fa   :  { %v255_v36 = vmul.f32 1.442695, %v253_v35 }
 0x2fb   :  { %v252_v37 = vpop.xlane.xlu1 %251 }
 0x2fc   :  { %1370 = vpow2.f32 %v255_v36  ;;  %v254_v38 = vsub.f32 %v242_v29, %v252_v37 }
 0x2fe   :  { %v257_v39 = vmul.f32 1.442695, %v254_v38 }
 0x2ff   :  { %v272_v40 = vpop.permute.xlu1 %271 }
 0x300   :  { %1372 = vpow2.f32 %v257_v39  ;;  %v278_v41 = vsel %vm276_vm4, %v272_v40, 0 }
 0x301   :  { %1236 = vmatpush3.bf16.msra.mxu1 %v278_v41 }
 0x302   :  { %1247 = vmatprep.subr.bf16.mxu1 %v1501_v0 }
 0x303   :  { %v321_v42 = vpop.permute.xlu1 %320 }
 0x304   :  { %v326_v43 = vsel %vm276_vm4, %v321_v42, 0 }
 0x305   :  { %1242 = vmatpush3.bf16.msra.mxu0 %v326_v43 }
 0x306   :  { %v1371_v44 = vpop.eup %1370  ;;  %1253 = vmatprep.subr.bf16.mxu0 %v1501_v0 }
 0x307   :  { %v259_v45 = vsel %vm152_vm2, %v1371_v44, 0.0  ;;  %v371_v48 = vpop.permute.xlu1 %370 }
 0x308   :  { %260 = vadd.xlane.f32.xlu0 %v259_v45  ;;  %v376_v55 = vsel %vm152_vm2, %v371_v48, 0 }
 0x30a   :  { %v1373_v46 = vpop.eup %1372 }
 0x30b   :  { %v262_v47 = vsel %vm152_vm2, %v1373_v46, 0.0 }
 0x30c   :  { %263 = vadd.xlane.f32.xlu1 %v262_v47 }
 0x31d   :  { %420 = vrot.lane.b32.xlu1 %v1618_v12, %s1505_s2 }
 0x31e   :  { %368 = vrot.lane.b32.xlu0 %v1615_v9, %s1506_s30 }
 0x321   :  { %418 = vrot.lane.b32.xlu1 %v1618_v12, %s1506_s30 }
 0x395   :  { %v261_v49 = vpop.xlane.xlu0 %260 }
 0x396   :  { %1374 = vrcp.f32 %v261_v49 }
 0x399   :  { %v264_v50 = vpop.xlane.xlu1 %263  ;;  %v369_v60 = vpop.permute.xlu0 %368 }
 0x39a   :  { %1376 = vrcp.f32 %v264_v50 }
 0x39d   :  { %v421_v57 = vpop.permute.xlu1 %420 }
 0x39e   :  { %v426_v59 = vsel %vm152_vm2, %v421_v57, 0 }
 0x3a0   :  { %v1375_v51 = vpop.eup %1374 }
 0x3a1   :  { %v267_v52 = vmul.f32 %v1375_v51, %v1371_v44  ;;  %v419_v61 = vpop.permute.xlu1 %418 }
 0x3a3   :  { %v269_v53 = vpack.c.bf16 %v267_v52, %v267_v52 }
 0x3a4   :  { %v1377_v54 = vpop.eup %1376 }
 0x3a5   :  { %v268_v56 = vmul.f32 %v1377_v54, %v1373_v46  ;;  %1238 = vmatmul.mubr.msk.bf16.vlgmr.msra.gmra.mrb[4].mxu1 %vm152_vm2, %v269_v53 }
 0x3a6   :  { %1248 = vmatpush3.bf16.xpose.msra.mxu1 %v376_v55  ;;  %1249 = vmatprep.mubr.msk.bf16.mxu1 %vm1502_vm0, %v1501_v0 }
 0x3a7   :  { %v270_v58 = vpack.c.bf16 %v268_v56, %v268_v56  ;;  %1259 = vmatprep.subr.bf16.mxu1 %v1501_v0 }
 0x3a9   :  { %1244 = vmatmul.mubr.msk.bf16.vlgmr.msra.gmra.mrb[8].mxu0 %vm152_vm2, %v270_v58 }
 0x3aa   :  { %1254 = vmatpush3.bf16.xpose.msra.mxu0 %v426_v59  ;;  %1255 = vmatprep.mubr.msk.bf16.mxu0 %vm1502_vm0, %v1501_v0 }
 0x3ab   :  { %1265 = vmatprep.subr.bf16.mxu0 %v1501_v0 }
 0x3ad   :  { %1250 = vmatmul.mubr.msk.bf16.vlgmr.msra.gmra.mrb[8].mxu1 %vm152_vm2, %v369_v60 }
 0x3ae   :  { %1261 = vmatprep.mubr.msk.bf16.mxu1 %vm1502_vm0, %v1501_v0 }
 0x3b1   :  { %1256 = vmatmul.mubr.msk.bf16.vlgmr.msra.gmra.mrb[12].mxu0 %vm152_vm2, %v419_v61 }
 0x3b2   :  { %1267 = vmatprep.mubr.msk.bf16.mxu0 %vm1502_vm0, %v1501_v0 }
 0x478   :  { %v1669_v62 = vpop.f32.mrb[4].mxu1 }
 0x479   :  { %v1239_v63 = vpop.f32.mrb[5].mxu1 }
 0x47a   :  { %v317_v1 = vpop.f32.mrb[6].mxu1 }
 0x47b   :  { %v1240_v2 = vpop.f32.mrb[7].mxu1 }
 0x47c   :  { %v1671_v3 = vpop.f32.mrb[8].mxu0 }
 0x47d   :  { %v1245_v4 = vpop.f32.mrb[9].mxu0 }
 0x47e   :  { %v365_v5 = vpop.f32.mrb[10].mxu0 }
 0x47f   :  { %v1246_v6 = vpop.f32.mrb[11].mxu0 }
 0x480   :  { %v412_v7 = vpop.f32.mrb[8].mxu1 }
 0x481   :  { %v413_v8 = vadd.f32 %v412_v7, %v1633_v21  ;;  %v1251_v10 = vpop.f32.mrb[9].mxu1 }
 0x482   :  { %v415_v11 = vpop.f32.mrb[10].mxu1 }
 0x483   :  { %v1252_v13 = vpop.f32.mrb[11].mxu1  ;;  %v468_v14 = vsel %vm152_vm2, %v413_v8, -inf }
 0x484   :  { %469 = vmax.xlane.f32.xlu1 %v468_v14  ;;  %v462_v15 = vpop.f32.mrb[12].mxu0 }
 0x485   :  { %v463_v16 = vadd.f32 %v462_v15, %v1633_v21  ;;  %v1257_v17 = vpop.f32.mrb[13].mxu0 }
 0x486   :  { %v465_v18 = vpop.f32.mrb[14].mxu0 }
 0x487   :  { %v1258_v19 = vpop.f32.mrb[15].mxu0  ;;  %v471_v20 = vsel %vm152_vm2, %v463_v16, -inf }
 0x488   :  { %472 = vmax.xlane.f32.xlu0 %v471_v20 }
 0x495   :  { %492 = vrot.lane.b32.xlu1 %v1615_v9, %s1507_s7 }
 0x499   :  { %590 = vrot.lane.b32.xlu1 %v1615_v9, %s1508_s8 }
 0x49e   :  { %540 = vrot.lane.b32.xlu0 %v1618_v12, %s1507_s7 }
 0x4a2   :  { %588 = vrot.lane.b32.xlu0 %v1615_v9, %s1509_s9 }
 0x511   :  { %v470_v22 = vpop.xlane.xlu1 %469 }
 0x512   :  { %v474_v23 = vsub.f32 %v413_v8, %v470_v22 }
 0x514   :  { %v476_v24 = vmul.f32 1.442695, %v474_v23 }
 0x515   :  { %v493_v25 = vpop.permute.xlu1 %492  ;;  %v473_v26 = vpop.xlane.xlu0 %472 }
 0x516   :  { %1378 = vpow2.f32 %v476_v24  ;;  %v498_v27 = vsel %vm276_vm4, %v493_v25, 0  ;;  %v475_v28 = vsub.f32 %v463_v16, %v473_v26 }
 0x517   :  { %1260 = vmatpush3.bf16.msra.mxu1 %v498_v27 }
 0x518   :  { %v478_v29 = vmul.f32 1.442695, %v475_v28  ;;  %1271 = vmatprep.subr.bf16.mxu1 %v1501_v0 }
 0x519   :  { %v541_v30 = vpop.permute.xlu0 %540  ;;  %v591_v36 = vpop.permute.xlu1 %590 }
 0x51a   :  { %1380 = vpow2.f32 %v478_v29  ;;  %v546_v31 = vsel %vm276_vm4, %v541_v30, 0  ;;  %v596_v43 = vsel %vm152_vm2, %v591_v36, 0 }
 0x51b   :  { %1266 = vmatpush3.bf16.msra.mxu0 %v546_v31 }
 0x51c   :  { %1277 = vmatprep.subr.bf16.mxu0 %v1501_v0 }
 0x51d   :  { %v589_v48 = vpop.permute.xlu0 %588 }
 0x520   :  { %v1379_v32 = vpop.eup %1378 }
 0x521   :  { %v480_v33 = vsel %vm152_vm2, %v1379_v32, 0.0 }
 0x522   :  { %481 = vadd.xlane.f32.xlu1 %v480_v33 }
 0x524   :  { %v1381_v34 = vpop.eup %1380 }
 0x525   :  { %v483_v35 = vsel %vm152_vm2, %v1381_v34, 0.0 }
 0x526   :  { %484 = vadd.xlane.f32.xlu1 %v483_v35 }
 0x537   :  { %640 = vrot.lane.b32.xlu1 %v1618_v12, %s1508_s8 }
 0x53b   :  { %638 = vrot.lane.b32.xlu1 %v1618_v12, %s1509_s9 }
 0x5af   :  { %v482_v37 = vpop.xlane.xlu1 %481 }
 0x5b0   :  { %1382 = vrcp.f32 %v482_v37 }
 0x5b3   :  { %v485_v38 = vpop.xlane.xlu1 %484 }
 0x5b4   :  { %1384 = vrcp.f32 %v485_v38 }
 0x5b7   :  { %v641_v45 = vpop.permute.xlu1 %640 }
 0x5b8   :  { %v646_v47 = vsel %vm152_vm2, %v641_v45, 0 }
 0x5ba   :  { %v1383_v39 = vpop.eup %1382 }
 0x5bb   :  { %v488_v40 = vmul.f32 %v1383_v39, %v1379_v32  ;;  %v639_v49 = vpop.permute.xlu1 %638 }
 0x5bd   :  { %v490_v41 = vpack.c.bf16 %v488_v40, %v488_v40 }
 0x5be   :  { %v1385_v42 = vpop.eup %1384 }
 0x5bf   :  { %v489_v44 = vmul.f32 %v1385_v42, %v1381_v34  ;;  %1262 = vmatmul.mubr.msk.bf16.vlgmr.msra.gmra.mrb[12].mxu1 %vm152_vm2, %v490_v41 }
 0x5c0   :  { %1272 = vmatpush3.bf16.xpose.msra.mxu1 %v596_v43  ;;  %1273 = vmatprep.mubr.msk.bf16.mxu1 %vm1502_vm0, %v1501_v0 }
 0x5c1   :  { %v491_v46 = vpack.c.bf16 %v489_v44, %v489_v44  ;;  %1283 = vmatprep.subr.bf16.mxu1 %v1501_v0 }
 0x5c3   :  { %1268 = vmatmul.mubr.msk.bf16.vlgmr.msra.gmra.mrb[16].mxu0 %vm152_vm2, %v491_v46 }
 0x5c4   :  { %1278 = vmatpush3.bf16.xpose.msra.mxu0 %v646_v47  ;;  %1279 = vmatprep.mubr.msk.bf16.mxu0 %vm1502_vm0, %v1501_v0 }
 0x5c5   :  { %1289 = vmatprep.subr.bf16.mxu0 %v1501_v0 }
 0x5c7   :  { %1274 = vmatmul.mubr.msk.bf16.vlgmr.msra.gmra.mrb[16].mxu1 %vm152_vm2, %v589_v48 }
 0x5c8   :  { %1285 = vmatprep.mubr.msk.bf16.mxu1 %vm1502_vm0, %v1501_v0 }
 0x5cb   :  { %1280 = vmatmul.mubr.msk.bf16.vlgmr.msra.gmra.mrb[20].mxu0 %vm152_vm2, %v639_v49 }
 0x5cc   :  { %1291 = vmatprep.mubr.msk.bf16.mxu0 %vm1502_vm0, %v1501_v0 }
 0x692   :  { %v1705_v50 = vpop.f32.mrb[12].mxu1 }
 0x693   :  { %v1263_v51 = vpop.f32.mrb[13].mxu1 }
 0x694   :  { %v537_v52 = vpop.f32.mrb[14].mxu1 }
 0x695   :  { %v1264_v53 = vpop.f32.mrb[15].mxu1 }
 0x696   :  { %v1707_v54 = vpop.f32.mrb[16].mxu0 }
 0x697   :  { %v1350_v55 = vpack.i.bf16 %v1707_v54, %v1705_v50  ;;  %v1269_v56 = vpop.f32.mrb[17].mxu0 }
 0x698   :  { %v585_v57 = vpop.f32.mrb[18].mxu0 }
 0x699   :  { %v1270_v58 = vpop.f32.mrb[19].mxu0 }
 0x69a   :  { %v632_v59 = vpop.f32.mrb[16].mxu1 }
 0x69b   :  { %v633_v60 = vadd.f32 %v632_v59, %v1633_v21  ;;  %v1275_v61 = vpop.f32.mrb[17].mxu1 }
 0x69c   :  { %v635_v63 = vpop.f32.mrb[18].mxu1 }
 0x69d   :  { %v1276_v1 = vpop.f32.mrb[19].mxu1  ;;  %v688_v2 = vsel %vm152_vm2, %v633_v60, -inf }
 0x69e   :  { %689 = vmax.xlane.f32.xlu0 %v688_v2  ;;  %v682_v4 = vpop.f32.mrb[20].mxu0 }
 0x69f   :  { %v683_v5 = vadd.f32 %v682_v4, %v1633_v21  ;;  %v1281_v6 = vpop.f32.mrb[21].mxu0 }
 0x6a0   :  { %v685_v7 = vpop.f32.mrb[22].mxu0 }
 0x6a1   :  { %v1282_v8 = vpop.f32.mrb[23].mxu0  ;;  %v691_v10 = vsel %vm152_vm2, %v683_v5, -inf }
 0x6a2   :  { %692 = vmax.xlane.f32.xlu1 %v691_v10 }
 0x6b3   :  { %712 = vrot.lane.b32.xlu1 %v1615_v9, %s1510_s10 }
 0x6b7   :  { %810 = vrot.lane.b32.xlu1 %v1615_v9, %s1511_s11 }
 0x6bb   :  { %860 = vrot.lane.b32.xlu1 %v1618_v12, %s1511_s11 }
 0x6bf   :  { %858 = vrot.lane.b32.xlu1 %v1618_v12, %s1512_s12 }
 0x72b   :  { %v690_v11 = vpop.xlane.xlu0 %689 }
 0x72c   :  { %v694_v13 = vsub.f32 %v633_v60, %v690_v11 }
 0x72e   :  { %v696_v14 = vmul.f32 1.442695, %v694_v13 }
 0x72f   :  { %v693_v15 = vpop.xlane.xlu1 %692 }
 0x730   :  { %1386 = vpow2.f32 %v696_v14  ;;  %v695_v16 = vsub.f32 %v683_v5, %v693_v15 }
 0x732   :  { %v698_v17 = vmul.f32 1.442695, %v695_v16 }
 0x733   :  { %v713_v18 = vpop.permute.xlu1 %712 }
 0x734   :  { %1388 = vpow2.f32 %v698_v17  ;;  %v718_v19 = vsel %vm276_vm4, %v713_v18, 0 }
 0x735   :  { %1284 = vmatpush3.bf16.msra.mxu1 %v718_v19 }
 0x736   :  { %1295 = vmatprep.subr.bf16.mxu1 %v1501_v0 }
 0x737   :  { %v811_v30 = vpop.permute.xlu1 %810 }
 0x738   :  { %v816_v34 = vsel %vm152_vm2, %v811_v30, 0 }
 0x73a   :  { %v1387_v20 = vpop.eup %1386 }
 0x73b   :  { %v700_v22 = vsel %vm152_vm2, %v1387_v20, 0.0  ;;  %v861_v36 = vpop.permute.xlu1 %860 }
 0x73c   :  { %701 = vadd.xlane.f32.xlu0 %v700_v22  ;;  %v866_v38 = vsel %vm152_vm2, %v861_v36, 0 }
 0x73e   :  { %v1389_v23 = vpop.eup %1388 }
 0x73f   :  { %v703_v24 = vsel %vm152_vm2, %v1389_v23, 0.0  ;;  %v859_v40 = vpop.permute.xlu1 %858 }
 0x740   :  { %704 = vadd.xlane.f32.xlu0 %v703_v24  ;;  %v1369_v24 = vld [vmem:[#allocation7 + $0x8] sm:$0xff]  }
 0x756   :  { %760 = vrot.lane.b32.xlu0 %v1618_v12, %s1510_s10 }
 0x75a   :  { %808 = vrot.lane.b32.xlu0 %v1615_v9, %s1512_s12 }
 0x7c9   :  { %v702_v25 = vpop.xlane.xlu0 %701 }
 0x7ca   :  { %1390 = vrcp.f32 %v702_v25 }
 0x7cd   :  { %v705_v26 = vpop.xlane.xlu0 %704 }
 0x7ce   :  { %1392 = vrcp.f32 %v705_v26 }
 0x7d1   :  { %v761_v27 = vpop.permute.xlu0 %760 }
 0x7d2   :  { %v766_v28 = vsel %vm276_vm4, %v761_v27, 0 }
 0x7d3   :  { %1290 = vmatpush3.bf16.msra.mxu0 %v766_v28 }
 0x7d4   :  { %v1391_v29 = vpop.eup %1390  ;;  %1301 = vmatprep.subr.bf16.mxu0 %v1501_v0 }
 0x7d5   :  { %v708_v31 = vmul.f32 %v1391_v29, %v1387_v20  ;;  %v809_v39 = vpop.permute.xlu0 %808 }
 0x7d7   :  { %v710_v32 = vpack.c.bf16 %v708_v31, %v708_v31 }
 0x7d8   :  { %v1393_v33 = vpop.eup %1392 }
 0x7d9   :  { %v709_v35 = vmul.f32 %v1393_v33, %v1389_v23  ;;  %1286 = vmatmul.mubr.msk.bf16.vlgmr.msra.gmra.mrb[20].mxu1 %vm152_vm2, %v710_v32 }
 0x7da   :  { %1296 = vmatpush3.bf16.xpose.msra.mxu1 %v816_v34  ;;  %1297 = vmatprep.mubr.msk.bf16.mxu1 %vm1502_vm0, %v1501_v0 }
 0x7db   :  { %v711_v37 = vpack.c.bf16 %v709_v35, %v709_v35  ;;  %1307 = vmatprep.subr.bf16.mxu1 %v1501_v0 }
 0x7dd   :  { %1292 = vmatmul.mubr.msk.bf16.vlgmr.msra.gmra.mrb[24].mxu0 %vm152_vm2, %v711_v37 }
 0x7de   :  { %1302 = vmatpush3.bf16.xpose.msra.mxu0 %v866_v38  ;;  %1303 = vmatprep.mubr.msk.bf16.mxu0 %vm1502_vm0, %v1501_v0 }
 0x7df   :  { %1313 = vmatprep.subr.bf16.mxu0 %v1501_v0 }
 0x7e1   :  { %1298 = vmatmul.mubr.msk.bf16.vlgmr.msra.gmra.mrb[24].mxu1 %vm152_vm2, %v809_v39 }
 0x7e2   :  { %1309 = vmatprep.mubr.msk.bf16.mxu1 %vm1502_vm0, %v1501_v0 }
 0x7e5   :  { %1304 = vmatmul.mubr.msk.bf16.vlgmr.msra.gmra.mrb[28].mxu0 %vm152_vm2, %v859_v40 }
 0x7e6   :  { %1315 = vmatprep.mubr.msk.bf16.mxu0 %vm1502_vm0, %v1501_v0 }
 0x8ac   :  { %v754_v41 = vpop.f32.mrb[20].mxu1 }
 0x8ad   :  { %v1287_v42 = vpop.f32.mrb[21].mxu1 }
 0x8ae   :  { %v757_v43 = vpop.f32.mrb[22].mxu1 }
 0x8af   :  { %v1288_v44 = vpop.f32.mrb[23].mxu1 }
 0x8b0   :  { %v802_v45 = vpop.f32.mrb[24].mxu0 }
 0x8b1   :  { %v1355_v46 = vpack.i.bf16 %v802_v45, %v754_v41  ;;  %v1293_v47 = vpop.f32.mrb[25].mxu0 }
 0x8b2   :  { %v805_v48 = vpop.f32.mrb[26].mxu0 }
 0x8b3   :  { %v1294_v49 = vpop.f32.mrb[27].mxu0 }
 0x8b4   :  { %v852_v51 = vpop.f32.mrb[24].mxu1  ;;  %v1171_v49 = vld [vmem:[%s1790_s4] ss:$0 sm:$0xff] }
 0x8b5   :  { %v853_v52 = vadd.f32 %v852_v51, %v1633_v21  ;;  %v1299_v53 = vpop.f32.mrb[25].mxu1 }
 0x8b6   :  { %v855_v56 = vpop.f32.mrb[26].mxu1 }
 0x8b7   :  { %v1300_v57 = vpop.f32.mrb[27].mxu1  ;;  %v908_v58 = vsel %vm152_vm2, %v853_v52, -inf }
 0x8b8   :  { %909 = vmax.xlane.f32.xlu0 %v908_v58  ;;  %v902_v59 = vpop.f32.mrb[28].mxu0 }
 0x8b9   :  { %v903_v60 = vadd.f32 %v902_v59, %v1633_v21  ;;  %v1305_v61 = vpop.f32.mrb[29].mxu0 }
 0x8ba   :  { %v905_v63 = vpop.f32.mrb[30].mxu0 }
 0x8bb   :  { %v1306_v1 = vpop.f32.mrb[31].mxu0  ;;  %v911_v2 = vsel %vm152_vm2, %v903_v60, -inf }
 0x8bc   :  { %912 = vmax.xlane.f32.xlu1 %v911_v2 }
 0x8cd   :  { %932 = vrot.lane.b32.xlu1 %v1615_v9, %s1513_s13 }
 0x8d1   :  { %1351 = vrot.lane.b32.xlu1 %v1350_v55, %s1514_s14 }
 0x8d5   :  { %1356 = vrot.lane.b32.xlu1 %v1355_v46, %s1515_s15 }
 0x945   :  { %v910_v4 = vpop.xlane.xlu0 %909 }
 0x946   :  { %v914_v5 = vsub.f32 %v853_v52, %v910_v4 }
 0x948   :  { %v916_v21 = vmul.f32 1.442695, %v914_v5 }
 0x949   :  { %v913_v6 = vpop.xlane.xlu1 %912 }
 0x94a   :  { %1394 = vpow2.f32 %v916_v21  ;;  %v915_v7 = vsub.f32 %v903_v60, %v913_v6 }
 0x94c   :  { %v918_v8 = vmul.f32 1.442695, %v915_v7 }
 0x94d   :  { %v933_v10 = vpop.permute.xlu1 %932 }
 0x94e   :  { %1396 = vpow2.f32 %v918_v8  ;;  %v938_v11 = vsel %vm276_vm4, %v933_v10, 0 }
 0x94f   :  { %1308 = vmatpush3.bf16.msra.mxu1 %v938_v11 }
 0x950   :  { %1319 = vmatprep.subr.bf16.mxu1 %v1501_v0 }
 0x951   :  { %v1352_v34 = vpop.permute.xlu1 %1351 }
 0x952   :  { %v1354_v36 = vunpack.i.h.bf16 %v1352_v34  ;;  %v1353_v37 = vunpack.i.l.bf16 %v1352_v34 }
 0x954   :  { %v1395_v9 = vpop.eup %1394  ;;  %v1053_v40 = vsel %vm152_vm2, %v1671_v3, %v1354_v36  ;;  %v1052_v41 = vsel %vm152_vm2, %v1669_v62, %v1353_v37 }
 0x955   :  { %v920_v50 = vsel %vm152_vm2, %v1395_v9, 0.0  ;;  %v1357_v35 = vpop.permute.xlu1 %1356 }
 0x956   :  { %921 = vadd.xlane.f32.xlu0 %v920_v50  ;;  %v1359_v38 = vunpack.i.h.bf16 %v1357_v35  ;;  %v1358_v39 = vunpack.i.l.bf16 %v1357_v35 }
 0x958   :  { %v1397_v54 = vpop.eup %1396  ;;  %v1055_v44 = vsel %vm1054_vm5, %v1052_v41, %v1358_v39  ;;  %v1056_v45 = vsel %vm1054_vm5, %v1053_v40, %v1359_v38 }
 0x959   :  { %v923_v55 = vsel %vm152_vm2, %v1397_v54, 0.0 }
 0x95a   :  { %924 = vadd.xlane.f32.xlu0 %v923_v55 }
 0x970   :  { %980 = vrot.lane.b32.xlu0 %v1618_v12, %s1513_s13  ;;  %v1368_v12 = vld [vmem:[#allocation7] sm:$0xff]  }
 0x9e3   :  { %v922_v13 = vpop.xlane.xlu0 %921 }
 0x9e4   :  { %1398 = vrcp.f32 %v922_v13 }
 0x9e7   :  { %v925_v14 = vpop.xlane.xlu0 %924 }
 0x9e8   :  { %1400 = vrcp.f32 %v925_v14 }
 0x9eb   :  { %v981_v15 = vpop.permute.xlu0 %980 }
 0x9ec   :  { %v986_v16 = vsel %vm276_vm4, %v981_v15, 0 }
 0x9ed   :  { %1314 = vmatpush3.bf16.msra.mxu0 %v986_v16 }
 0x9ee   :  { %v1399_v17 = vpop.eup %1398 }
 0x9ef   :  { %v928_v18 = vmul.f32 %v1399_v17, %v1395_v9 }
 0x9f1   :  { %v930_v19 = vpack.c.bf16 %v928_v18, %v928_v18 }
 0x9f2   :  { %v1401_v20 = vpop.eup %1400 }
 0x9f3   :  { %v929_v22 = vmul.f32 %v1401_v20, %v1397_v54  ;;  %1310 = vmatmul.mubr.msk.bf16.vlgmr.msra.gmra.mrb[28].mxu1 %vm152_vm2, %v930_v19 }
 0x9f4   :  { %1323 = vmatprep.mubr.msk.bf16.mxu1 %vm1502_vm0, %v1501_v0  ;;  %1320 = vmatpush3.bf16.msra.mxu1 %v1368_v12 }
 0x9f5   :  { %v931_v23 = vpack.c.bf16 %v929_v22, %v929_v22  ;;  %1321 = vmatprep.subr.bf16.mxu1 %v1501_v0 }
 0x9f7   :  { %1316 = vmatmul.mubr.msk.bf16.vlgmr.msra.gmra.mrb[32].mxu0 %vm152_vm2, %v931_v23 }
 0x9f8   :  { %1322 = vmatpush3.bf16.msra.mxu1 %v1369_v24 }
 0xac6   :  { %v974_v25 = vpop.f32.mrb[28].mxu1 }
 0xac7   :  { %v1311_v26 = vpop.f32.mrb[29].mxu1 }
 0xac8   :  { %v977_v27 = vpop.f32.mrb[30].mxu1 }
 0xac9   :  { %v1312_v28 = vpop.f32.mrb[31].mxu1 }
 0xaca   :  { %v1022_v29 = vpop.f32.mrb[32].mxu0 }
 0xacb   :  { %v1360_v30 = vpack.i.bf16 %v1022_v29, %v974_v25  ;;  %v1317_v31 = vpop.f32.mrb[33].mxu0 }
 0xacc   :  { %v1025_v32 = vpop.f32.mrb[34].mxu0 }
 0xacd   :  { %1361 = vrot.lane.b32.xlu0 %v1360_v30, %s1516_s16  ;;  %v1318_v33 = vpop.f32.mrb[35].mxu0 }
 0xb3f   :  { %v1362_v0 = vpop.permute.xlu0 %1361 }
 0xb40   :  { %v1364_v42 = vunpack.i.h.bf16 %v1362_v0  ;;  %v1363_v43 = vunpack.i.l.bf16 %v1362_v0 }
 0xb42   :  { %v1059_v46 = vsel %vm1057_vm6, %v1056_v45, %v1364_v42  ;;  %v1058_v47 = vsel %vm1057_vm6, %v1055_v44, %v1363_v43 }
 0xb43   :  { %v1060_v48 = vpack.c.bf16 %v1059_v46, %v1058_v47 }
 0xb45   :  { %1324 = vmatmul.mubr.msk.bf16.vlgmr.msra.gmra.mrb[32].mxu1 %vm93_vm1, %v1060_v48 }
 0xc18   :  { %v1121_v51 = vpop.f32.mrb[32].mxu1 }
 0xc19   :  { %v1122_v3 = vadd.f32 %v1171_v49, %v1121_v51  ;;  %v1325_v52 = vpop.f32.mrb[33].mxu1 }
 0xc1a   :  { %v1124_v53 = vpop.f32.mrb[34].mxu1 }
 0xc1b   :  { %1128 = vst.msk [vmem:[#allocation8] sm:$0xff] %vm93_vm1, %v1122_v3  ;;  %v1125_v62 = vadd.f32 %v1171_v49, %v1124_v53  ;;  %v1326_v56 = vpop.f32.mrb[35].mxu1 }
 0xc1d   :  { %1129 = vst.msk [vmem:[#allocation8 + $0x8] sm:$0xff] %vm93_vm1, %v1125_v62 }
 0xc1e   :  { %1479 = shalt.err (!%p1476_p0)
}
 0xc1f   :  { %s1480_s23 = scalar_lea.hbm %s1791_s5, 256 }
 0xc20   :  { %p1481_p1 = scmp.ne.s32.totalorder %s1791_s5, %s1480_s23  ;;  %p1484_p2 = scmp.lt.u32.totalorder %s1480_s23, %s1791_s5 }
 0xc22   :  { %p1486_p3 = pnand %p1484_p2, %p1481_p1 }
 0xc24   :  { %1489 = shalt.err (!%p1486_p3)
}
 0xc25   :  { %s1518_s28 = smov 128  }
 0xc26   :  { %1141 = dma.vmem_to_hbm [thread:$0]  %s1136_s19, 256, %s1791_s5, [#allocation4], %s1518_s28, %s1518_s28, %s1514_s14  }
 0xc27   :  { %1494 = dma.done.wait [#allocation4], 256  }
 0xc28   :  { %1495 = vsyncadd [#allocation4], 4294967040 }
 0xc29   :  { %1145 = vsyncpa [#allocation3], 1 }
 0xc2a   :  { %1146 = vsyncpa [#allocation6], 1 }
 0xc2b   :  { %1147 = vsyncpa [#allocation4], 1 }

</bundles_post_ra>
